<compile_context>
chip_gen: v6e
topology: v6e:2x2x1
jax: 0.10.0
libtpu: 0.0.40
codegen_flags: <defaults>
</compile_context>

<pallas_src>
import jax
import jax.numpy as jnp
from jax.experimental import pallas as pl
from jax.experimental.pallas import tpu as pltpu


_HIDDEN = 64    # hidden width 50 padded to 64 (zero-padded -> numerically identical)
_OUT_PAD = 128  # output width 1 padded to 128 for lane-dense stores


# ---------------------------------------------------------------------------
# Pallas kernel: fused 4-layer MLP + sigmoid on one batch tile
# ---------------------------------------------------------------------------
def _discriminator_kernel(s_ref, a_ref,
                          w1s_ref, w1a_ref, b1_ref,
                          w2_ref, b2_ref,
                          w3_ref, b3_ref,
                          w4_ref, b4_ref,
                          out_ref):
    cdt = s_ref.dtype  # compute dtype of the streamed batch (f32 or bf16)

    s = s_ref[...]
    a = a_ref[...]

    # Layer 1: split-K matmul replaces the concat([states, actions]) @ W1.
    h = jnp.dot(s, w1s_ref[...].astype(cdt), preferred_element_type=jnp.float32)
    h = h + jnp.dot(a, w1a_ref[...].astype(cdt), preferred_element_type=jnp.float32)
    h = jnp.tanh(h + b1_ref[...])

    # Layers 2-3 (f32 accumulate, nonlinearity in f32).
    h = jnp.tanh(
        jnp.dot(h.astype(cdt), w2_ref[...].astype(cdt),
                preferred_element_type=jnp.float32) + b2_ref[...])
    h = jnp.tanh(
        jnp.dot(h.astype(cdt), w3_ref[...].astype(cdt),
                preferred_element_type=jnp.float32) + b3_ref[...])

    # Layer 4 (padded to 128 output lanes) + sigmoid via EUP reciprocal.
    logits = jnp.dot(h.astype(cdt), w4_ref[...].astype(cdt),
                     preferred_element_type=jnp.float32) + b4_ref[...]
    out_ref[...] = pl.reciprocal(1.0 + jnp.exp(-logits),
                                 approx=True).astype(out_ref.dtype)


def _round_up(x, m):
    return (x + m - 1) // m * m


# ---------------------------------------------------------------------------
# Wrapper: batch-tiled, pipelined pallas_call
# ---------------------------------------------------------------------------
def _mlp_sigmoid_pallas(states, act_feat, params, *,
                        compute_dtype=jnp.bfloat16, block_batch=512):
    B, Ds = states.shape
    Da = act_feat.shape[-1]

    # Halve the dominant HBM stream if bf16 compute is requested.
    states = states.astype(compute_dtype)
    act_feat = act_feat.astype(compute_dtype)

    # Batch tile: multiple of 8 sublanes, <= block_batch (sized well under the
    # 32 MiB default scoped VMEM on v7x/v6e even with double buffering).
    TB = min(int(block_batch), _round_up(B, 8))
    grid = (pl.cdiv(B, TB),)

    def batch_spec(width):
        return pl.BlockSpec((TB, width), lambda i: (i, 0))

    def resident_spec(arr):  # constant index_map -> stays in VMEM across steps
        return pl.BlockSpec(arr.shape, lambda i: (0, 0))

    w_args = (params["w1_s"], params["w1_a"], params["b1"],
              params["w2"], params["b2"],
              params["w3"], params["b3"],
              params["w4"], params["b4"])

    in_bytes = jnp.dtype(compute_dtype).itemsize
    flops = 2 * B * (Ds * _HIDDEN + Da * _HIDDEN
                     + 2 * _HIDDEN * _HIDDEN + _HIDDEN * _OUT_PAD)
    transcendentals = B * (3 * _HIDDEN + 2 * _OUT_PAD)
    bytes_accessed = (B * (Ds + Da) * in_bytes + B * _OUT_PAD * 4
                      + sum(int(w.size) * w.dtype.itemsize for w in w_args))

    out = pl.pallas_call(
        _discriminator_kernel,
        out_shape=jax.ShapeDtypeStruct((B, _OUT_PAD), jnp.float32),
        grid=grid,
        in_specs=[batch_spec(Ds), batch_spec(Da)]
                 + [resident_spec(w) for w in w_args],
        out_specs=pl.BlockSpec((TB, _OUT_PAD), lambda i: (i, 0)),
        compiler_params=pltpu.CompilerParams(
            dimension_semantics=("parallel",)),
        cost_estimate=pl.CostEstimate(flops=flops,
                                      transcendentals=transcendentals,
                                      bytes_accessed=bytes_accessed),
    )(states, act_feat, *w_args)

    return out[:, :1]  # drop the 127 padded (lane-filler) output columns


# ---------------------------------------------------------------------------
# Parameter construction (PyTorch-default-style init, then zero-padded)
# ---------------------------------------------------------------------------
def init_discriminator_params(key, state_dim, action_dim, discrete):
    act_feat_dim = state_dim if discrete else action_dim
    net_in_dim = state_dim + act_feat_dim
    dims = [(net_in_dim, 50), (50, 50), (50, 50), (50, 1)]
    keys = jax.random.split(key, 2 * len(dims) + 1)

    raw = {}
    for i, (fan_in, fan_out) in enumerate(dims):
        bound = 1.0 / float(fan_in) ** 0.5
        raw[f"w{i + 1}"] = jax.random.uniform(
            keys[2 * i], (fan_in, fan_out), jnp.float32, -bound, bound)
        raw[f"b{i + 1}"] = jax.random.uniform(
            keys[2 * i + 1], (1, fan_out), jnp.float32, -bound, bound)

    def pad2(x, rows, cols):
        return jnp.pad(x, ((0, rows - x.shape[0]), (0, cols - x.shape[1])))

    params = {"ref": raw}
    w1 = raw["w1"]
    params["w1_s"] = pad2(w1[:state_dim], state_dim, _HIDDEN)
    params["w1_a"] = pad2(w1[state_dim:], act_feat_dim, _HIDDEN)
    params["b1"] = pad2(raw["b1"], 1, _HIDDEN)
    params["w2"] = pad2(raw["w2"], _HIDDEN, _HIDDEN)
    params["b2"] = pad2(raw["b2"], 1, _HIDDEN)
    params["w3"] = pad2(raw["w3"], _HIDDEN, _HIDDEN)
    params["b3"] = pad2(raw["b3"], 1, _HIDDEN)
    params["w4"] = pad2(raw["w4"], _HIDDEN, _OUT_PAD)
    params["b4"] = pad2(raw["b4"], 1, _OUT_PAD)

    if discrete:
        # nn.Embedding default init: N(0, 1)
        params["emb"] = jax.random.normal(
            keys[-1], (action_dim, state_dim), jnp.float32)
    return params


# ---------------------------------------------------------------------------
# Forward (mirrors Discriminator.forward)
# ---------------------------------------------------------------------------
def discriminator_forward(params, states, actions, discrete, *,
                          compute_dtype=jnp.bfloat16, block_batch=512):
    if discrete:
        # Embedding gather is cheap glue done in plain JAX.
        act_feat = params["emb"][actions.astype(jnp.int32)]
    else:
        act_feat = actions
    return _mlp_sigmoid_pallas(states, act_feat, params,
                               compute_dtype=compute_dtype,
                               block_batch=block_batch)


# Pure-JAX reference (uses the raw, unpadded weights).
def discriminator_forward_ref(params, states, actions, discrete):
    r = params["ref"]
    if discrete:
        act_feat = params["emb"][actions.astype(jnp.int32)]
    else:
        act_feat = actions
    sa = jnp.concatenate([states, act_feat], axis=-1)
    h = jnp.tanh(sa @ r["w1"] + r["b1"])
    h = jnp.tanh(h @ r["w2"] + r["b2"])
    h = jnp.tanh(h @ r["w3"] + r["b3"])
    return jax.nn.sigmoid(h @ r["w4"] + r["b4"])


# ---------------------------------------------------------------------------
if __name__ == "__main__":
    key = jax.random.PRNGKey(0)
    kc, kd, ks, ka, kai, ks2 = jax.random.split(key, 6)

    state_dim = 16
    action_dim = 6

    # ---- continuous-action discriminator, f32 compute, single tile ---------
    batch = 8
    params_c = init_discriminator_params(kc, state_dim, action_dim,
                                         discrete=False)
    states = jax.random.normal(ks, (batch, state_dim), jnp.float32)
    actions = jax.random.normal(ka, (batch, action_dim), jnp.float32)

    out_c = discriminator_forward(params_c, states, actions, discrete=False,
                                  compute_dtype=jnp.float32)
    out_c = jax.block_until_ready(out_c)
    ref_c = discriminator_forward_ref(params_c, states, actions, discrete=False)
    assert out_c.shape == (batch, 1)
    # approx-reciprocal sigmoid -> slightly relaxed tolerance
    assert jnp.allclose(out_c, ref_c, atol=5e-3, rtol=5e-3), (
        float(jnp.max(jnp.abs(out_c - ref_c))))

    # ---- discrete-action discriminator, bf16 compute, multi-tile grid ------
    batch2 = 48
    params_d = init_discriminator_params(kd, state_dim, action_dim,
                                         discrete=True)
    states2 = jax.random.normal(ks2, (batch2, state_dim), jnp.float32)
    actions_i = jax.random.randint(kai, (batch2,), 0, action_dim)

    out_d = discriminator_forward(params_d, states2, actions_i, discrete=True,
                                  compute_dtype=jnp.bfloat16, block_batch=16)
    out_d = jax.block_until_ready(out_d)
    ref_d = discriminator_forward_ref(params_d, states2, actions_i,
                                      discrete=True)
    assert out_d.shape == (batch2, 1)
    assert jnp.allclose(out_d, ref_d, atol=2e-2, rtol=2e-2), (
        float(jnp.max(jnp.abs(out_d - ref_d))))

    print("KERNEL_OK")
</pallas_src>

<mosaic_0001>
module attributes {stable_mosaic.version = 11 : i64} {
  func.func @_discriminator_kernel(%arg0: i32, %arg1: memref<8x16xf32, #tpu.memory_space<vmem>>, %arg2: memref<8x6xf32, #tpu.memory_space<vmem>>, %arg3: memref<16x64xf32, #tpu.memory_space<vmem>>, %arg4: memref<6x64xf32, #tpu.memory_space<vmem>>, %arg5: memref<1x64xf32, #tpu.memory_space<vmem>>, %arg6: memref<64x64xf32, #tpu.memory_space<vmem>>, %arg7: memref<1x64xf32, #tpu.memory_space<vmem>>, %arg8: memref<64x64xf32, #tpu.memory_space<vmem>>, %arg9: memref<1x64xf32, #tpu.memory_space<vmem>>, %arg10: memref<64x128xf32, #tpu.memory_space<vmem>>, %arg11: memref<1x128xf32, #tpu.memory_space<vmem>>, %arg12: memref<8x128xf32, #tpu.memory_space<vmem>>) attributes {dimension_semantics = [#tpu.dimension_semantics<parallel>], iteration_bounds = array<i64: 1>, scalar_prefetch = 0 : i64, scratch_operands = 0 : i64, tpu.core_type = #tpu.core_type<tc>, window_params = [{transform_indices = @transform_0, window_bounds = array<i64: 8, 16>}, {transform_indices = @transform_1, window_bounds = array<i64: 8, 6>}, {pipeline_mode = #tpu.pipeline_mode<synchronous>, transform_indices = @transform_2, window_bounds = array<i64: 16, 64>}, {pipeline_mode = #tpu.pipeline_mode<synchronous>, transform_indices = @transform_3, window_bounds = array<i64: 6, 64>}, {pipeline_mode = #tpu.pipeline_mode<synchronous>, transform_indices = @transform_4, window_bounds = array<i64: 1, 64>}, {pipeline_mode = #tpu.pipeline_mode<synchronous>, transform_indices = @transform_5, window_bounds = array<i64: 64, 64>}, {pipeline_mode = #tpu.pipeline_mode<synchronous>, transform_indices = @transform_6, window_bounds = array<i64: 1, 64>}, {pipeline_mode = #tpu.pipeline_mode<synchronous>, transform_indices = @transform_7, window_bounds = array<i64: 64, 64>}, {pipeline_mode = #tpu.pipeline_mode<synchronous>, transform_indices = @transform_8, window_bounds = array<i64: 1, 64>}, {pipeline_mode = #tpu.pipeline_mode<synchronous>, transform_indices = @transform_9, window_bounds = array<i64: 64, 128>}, {pipeline_mode = #tpu.pipeline_mode<synchronous>, transform_indices = @transform_10, window_bounds = array<i64: 1, 128>}, {transform_indices = @transform_11, window_bounds = array<i64: 8, 128>}]} {
    %c0 = arith.constant 0 : index
    %c0_0 = arith.constant 0 : index
    %0 = vector.load %arg1[%c0, %c0_0] : memref<8x16xf32, #tpu.memory_space<vmem>>, vector<8x16xf32>
    %c0_1 = arith.constant 0 : index
    %c0_2 = arith.constant 0 : index
    %1 = vector.load %arg2[%c0_1, %c0_2] : memref<8x6xf32, #tpu.memory_space<vmem>>, vector<8x6xf32>
    %c0_3 = arith.constant 0 : index
    %c0_4 = arith.constant 0 : index
    %2 = vector.load %arg3[%c0_3, %c0_4] : memref<16x64xf32, #tpu.memory_space<vmem>>, vector<16x64xf32>
    %cst = arith.constant dense<0.000000e+00> : vector<8x64xf32>
    %3 = tpu.matmul %0, %2, %cst {dimension_numbers = #tpu.dot_dimension_numbers<[1], [0], [0], [1], [0, 0, 1, 1], [], []>} : vector<8x16xf32>, vector<16x64xf32>, vector<8x64xf32> -> vector<8x64xf32>
    %c0_5 = arith.constant 0 : index
    %c0_6 = arith.constant 0 : index
    %4 = vector.load %arg4[%c0_5, %c0_6] : memref<6x64xf32, #tpu.memory_space<vmem>>, vector<6x64xf32>
    %cst_7 = arith.constant dense<0.000000e+00> : vector<8x64xf32>
    %5 = tpu.matmul %1, %4, %cst_7 {dimension_numbers = #tpu.dot_dimension_numbers<[1], [0], [0], [1], [0, 0, 1, 1], [], []>} : vector<8x6xf32>, vector<6x64xf32>, vector<8x64xf32> -> vector<8x64xf32>
    %6 = arith.addf %3, %5 : vector<8x64xf32>
    %c0_8 = arith.constant 0 : index
    %c0_9 = arith.constant 0 : index
    %7 = vector.load %arg5[%c0_8, %c0_9] : memref<1x64xf32, #tpu.memory_space<vmem>>, vector<1x64xf32>
    %8 = vector.broadcast %7 : vector<1x64xf32> to vector<8x64xf32>
    %9 = arith.addf %6, %8 : vector<8x64xf32>
    %10 = math.tanh %9 : vector<8x64xf32>
    %c0_10 = arith.constant 0 : index
    %c0_11 = arith.constant 0 : index
    %11 = vector.load %arg6[%c0_10, %c0_11] : memref<64x64xf32, #tpu.memory_space<vmem>>, vector<64x64xf32>
    %cst_12 = arith.constant dense<0.000000e+00> : vector<8x64xf32>
    %12 = tpu.matmul %10, %11, %cst_12 {dimension_numbers = #tpu.dot_dimension_numbers<[1], [0], [0], [1], [0, 0, 1, 1], [], []>} : vector<8x64xf32>, vector<64x64xf32>, vector<8x64xf32> -> vector<8x64xf32>
    %c0_13 = arith.constant 0 : index
    %c0_14 = arith.constant 0 : index
    %13 = vector.load %arg7[%c0_13, %c0_14] : memref<1x64xf32, #tpu.memory_space<vmem>>, vector<1x64xf32>
    %14 = vector.broadcast %13 : vector<1x64xf32> to vector<8x64xf32>
    %15 = arith.addf %12, %14 : vector<8x64xf32>
    %16 = math.tanh %15 : vector<8x64xf32>
    %c0_15 = arith.constant 0 : index
    %c0_16 = arith.constant 0 : index
    %17 = vector.load %arg8[%c0_15, %c0_16] : memref<64x64xf32, #tpu.memory_space<vmem>>, vector<64x64xf32>
    %cst_17 = arith.constant dense<0.000000e+00> : vector<8x64xf32>
    %18 = tpu.matmul %16, %17, %cst_17 {dimension_numbers = #tpu.dot_dimension_numbers<[1], [0], [0], [1], [0, 0, 1, 1], [], []>} : vector<8x64xf32>, vector<64x64xf32>, vector<8x64xf32> -> vector<8x64xf32>
    %c0_18 = arith.constant 0 : index
    %c0_19 = arith.constant 0 : index
    %19 = vector.load %arg9[%c0_18, %c0_19] : memref<1x64xf32, #tpu.memory_space<vmem>>, vector<1x64xf32>
    %20 = vector.broadcast %19 : vector<1x64xf32> to vector<8x64xf32>
    %21 = arith.addf %18, %20 : vector<8x64xf32>
    %22 = math.tanh %21 : vector<8x64xf32>
    %c0_20 = arith.constant 0 : index
    %c0_21 = arith.constant 0 : index
    %23 = vector.load %arg10[%c0_20, %c0_21] : memref<64x128xf32, #tpu.memory_space<vmem>>, vector<64x128xf32>
    %cst_22 = arith.constant dense<0.000000e+00> : vector<8x128xf32>
    %24 = tpu.matmul %22, %23, %cst_22 {dimension_numbers = #tpu.dot_dimension_numbers<[1], [0], [0], [1], [0, 0, 1, 1], [], []>} : vector<8x64xf32>, vector<64x128xf32>, vector<8x128xf32> -> vector<8x128xf32>
    %c0_23 = arith.constant 0 : index
    %c0_24 = arith.constant 0 : index
    %25 = vector.load %arg11[%c0_23, %c0_24] : memref<1x128xf32, #tpu.memory_space<vmem>>, vector<1x128xf32>
    %26 = vector.broadcast %25 : vector<1x128xf32> to vector<8x128xf32>
    %27 = arith.addf %24, %26 : vector<8x128xf32>
    %cst_25 = arith.constant 0.000000e+00 : f32
    %28 = vector.broadcast %cst_25 : f32 to vector<8x128xf32>
    %29 = arith.subf %28, %27 : vector<8x128xf32>
    %30 = math.exp %29 : vector<8x128xf32>
    %cst_26 = arith.constant 1.000000e+00 : f32
    %31 = vector.broadcast %cst_26 : f32 to vector<8x128xf32>
    %32 = arith.addf %31, %30 : vector<8x128xf32>
    %33 = tpu.reciprocal %32 {approx = true} : vector<8x128xf32> -> vector<8x128xf32>
    %c0_27 = arith.constant 0 : index
    %c0_28 = arith.constant 0 : index
    %34 = vector.load %arg12[%c0_27, %c0_28] : memref<8x128xf32, #tpu.memory_space<vmem>>, vector<8x128xf32>
    tpu.vector_store %arg12[%c0_27, %c0_28], %33 {strides = array<i32>} : memref<8x128xf32, #tpu.memory_space<vmem>>, vector<8x128xf32>,
    return
  }
  func.func @transform_0(%arg0: i32) -> (i32, i32) {
    %c0_i32 = arith.constant 0 : i32
    %c0_i32_0 = arith.constant 0 : i32
    return %arg0, %c0_i32 : i32, i32
  }
  func.func @transform_1(%arg0: i32) -> (i32, i32) {
    %c0_i32 = arith.constant 0 : i32
    %c0_i32_0 = arith.constant 0 : i32
    return %arg0, %c0_i32 : i32, i32
  }
  func.func @transform_2(%arg0: i32) -> (i32, i32) {
    %c0_i32 = arith.constant 0 : i32
    %c0_i32_0 = arith.constant 0 : i32
    %c0_i32_1 = arith.constant 0 : i32
    return %c0_i32, %c0_i32_0 : i32, i32
  }
  func.func @transform_3(%arg0: i32) -> (i32, i32) {
    %c0_i32 = arith.constant 0 : i32
    %c0_i32_0 = arith.constant 0 : i32
    %c0_i32_1 = arith.constant 0 : i32
    return %c0_i32, %c0_i32_0 : i32, i32
  }
  func.func @transform_4(%arg0: i32) -> (i32, i32) {
    %c0_i32 = arith.constant 0 : i32
    %c0_i32_0 = arith.constant 0 : i32
    %c0_i32_1 = arith.constant 0 : i32
    return %c0_i32, %c0_i32_0 : i32, i32
  }
  func.func @transform_5(%arg0: i32) -> (i32, i32) {
    %c0_i32 = arith.constant 0 : i32
    %c0_i32_0 = arith.constant 0 : i32
    %c0_i32_1 = arith.constant 0 : i32
    return %c0_i32, %c0_i32_0 : i32, i32
  }
  func.func @transform_6(%arg0: i32) -> (i32, i32) {
    %c0_i32 = arith.constant 0 : i32
    %c0_i32_0 = arith.constant 0 : i32
    %c0_i32_1 = arith.constant 0 : i32
    return %c0_i32, %c0_i32_0 : i32, i32
  }
  func.func @transform_7(%arg0: i32) -> (i32, i32) {
    %c0_i32 = arith.constant 0 : i32
    %c0_i32_0 = arith.constant 0 : i32
    %c0_i32_1 = arith.constant 0 : i32
    return %c0_i32, %c0_i32_0 : i32, i32
  }
  func.func @transform_8(%arg0: i32) -> (i32, i32) {
    %c0_i32 = arith.constant 0 : i32
    %c0_i32_0 = arith.constant 0 : i32
    %c0_i32_1 = arith.constant 0 : i32
    return %c0_i32, %c0_i32_0 : i32, i32
  }
  func.func @transform_9(%arg0: i32) -> (i32, i32) {
    %c0_i32 = arith.constant 0 : i32
    %c0_i32_0 = arith.constant 0 : i32
    %c0_i32_1 = arith.constant 0 : i32
    return %c0_i32, %c0_i32_0 : i32, i32
  }
  func.func @transform_10(%arg0: i32) -> (i32, i32) {
    %c0_i32 = arith.constant 0 : i32
    %c0_i32_0 = arith.constant 0 : i32
    %c0_i32_1 = arith.constant 0 : i32
    return %c0_i32, %c0_i32_0 : i32, i32
  }
  func.func @transform_11(%arg0: i32) -> (i32, i32) {
    %c0_i32 = arith.constant 0 : i32
    %c0_i32_0 = arith.constant 0 : i32
    return %arg0, %c0_i32 : i32, i32
  }
}

</mosaic_0001>

<bundles_post_ra>
// kernel: tpu_custom_call.1
= control target key start
LH: loop header
LB: loop body
LE: loop exit
PB: predicated region body
PF: predicated region fallthrough
CT: control target
= control target key end

     0   :  { %16 = vsyncpa [#allocation3], 0  ;;  %s1048_s0 = inlined_call_operand.hbm [shape: f32[8,16], index: 0, kind: input, shape index: {}]   ;;  %s1049_s1 = inlined_call_operand.hbm [shape: f32[8,6], index: 1, kind: input, shape index: {}]   ;;  %s1050_s2 = inlined_call_operand.hbm [shape: f32[16,64], index: 2, kind: input, shape index: {}]   ;;  %s1051_s3 = inlined_call_operand.hbm [shape: f32[6,64], index: 3, kind: input, shape index: {}]   ;;  %s1052_s4 = inlined_call_operand.vmem [shape: f32[1,64], index: 4, kind: input, shape index: {}]   ;;  %s1053_s5 = inlined_call_operand.hbm [shape: f32[64,64], index: 5, kind: input, shape index: {}]   ;;  %s1054_s6 = inlined_call_operand.vmem [shape: f32[1,64], index: 6, kind: input, shape index: {}]   ;;  %s1055_s7 = inlined_call_operand.hbm [shape: f32[64,64], index: 7, kind: input, shape index: {}]   ;;  %s1056_s8 = inlined_call_operand.vmem [shape: f32[1,64], index: 8, kind: input, shape index: {}]   ;;  %s1057_s9 = inlined_call_operand.hbm [shape: f32[64,128], index: 9, kind: input, shape index: {}]   ;;  %s1058_s10 = inlined_call_operand.vmem [shape: f32[1,128], index: 10, kind: input, shape index: {}]   ;;  %s1059_s11 = inlined_call_operand.hbm [shape: f32[8,128], index: 11, kind: output, shape index: {}]  }
   0x1   :  { %17 = vsyncpa [#allocation6], 0 }
   0x2   :  { %18 = vsyncpa [#allocation9], 0 }
   0x3   :  { %19 = vsyncpa [#allocation12], 0 }
   0x4   :  { %20 = vsyncpa [#allocation4], 0  ;;  %s888_s17 = smov [#allocation5]   ;;  %s889_s19 = smov [#allocation8]  }
   0x5   :  { %s37_s18 = sshll.u32 %s888_s17, 4  ;;  %s59_s20 = sshll.u32 %s889_s19, 4  ;;  %s38_s18 = int_to_ptr.vmem [resolvable:$true] %s37_s18  ;;  %s60_s20 = int_to_ptr.vmem [resolvable:$true] %s59_s20 }
   0x6   :  { %s726_s21 = scalar_lea.vmem %s38_s18, 128  ;;  %p731_p1 = scmp.lt.s32.totalorder %s38_s18, %s38_s18 }
   0x7   :  { %p727_p0 = scmp.ne.s32.totalorder %s38_s18, %s726_s21  ;;  %p732_p2 = scmp.lt.s32.totalorder %s726_s21, %s726_s21 }
   0x9   :  { %p733_p3 = por %p732_p2, %p731_p1 }
   0xb   :  { %p734_p4 = pnand %p733_p3, %p727_p0 }
   0xd   :  { %737 = shalt.err (!%p734_p4)
}
   0xe   :  { %40 = dma.hbm_to_vmem [thread:$0]  %s1049_s1, 128, %s38_s18, [#allocation6]  }
   0xf   :  { %s746_s24 = scalar_lea.vmem %s60_s20, 128  ;;  %p751_p6 = scmp.lt.s32.totalorder %s60_s20, %s60_s20 }
  0x10   :  { %p747_p5 = scmp.ne.s32.totalorder %s60_s20, %s746_s24  ;;  %p752_p7 = scmp.lt.s32.totalorder %s746_s24, %s746_s24 }
  0x12   :  { %p753_p8 = por %p752_p7, %p751_p6 }
  0x14   :  { %p754_p9 = pnand %p753_p8, %p747_p5 }
  0x16   :  { %757 = shalt.err (!%p754_p9)
}
  0x17   :  { %62 = dma.hbm_to_vmem [thread:$0]  %s1051_s3, 128, %s60_s20, [#allocation9]  }
  0x18   :  { %s890_s27 = smov [#allocation11]   ;;  %s891_s29 = smov [#allocation2]  }
  0x19   :  { %s84_s28 = sshll.u32 %s890_s27, 4  ;;  %s27_s30 = sshll.u32 %s891_s29, 4  ;;  %s85_s28 = int_to_ptr.vmem [resolvable:$true] %s84_s28  ;;  %s28_s30 = int_to_ptr.vmem [resolvable:$true] %s27_s30 }
  0x1a   :  { %s766_s12 = scalar_lea.vmem %s85_s28, 1024  ;;  %p771_p11 = scmp.lt.s32.totalorder %s85_s28, %s85_s28 }
  0x1b   :  { %p767_p10 = scmp.ne.s32.totalorder %s85_s28, %s766_s12  ;;  %p772_p12 = scmp.lt.s32.totalorder %s766_s12, %s766_s12 }
  0x1d   :  { %p773_p13 = por %p772_p12, %p771_p11 }
  0x1f   :  { %p774_p0 = pnand %p773_p13, %p767_p10 }
  0x21   :  { %777 = shalt.err (!%p774_p0)
}
  0x22   :  { %s892_s1 = smov 128   ;;  %s893_s13 = smov 8  }
  0x23   :  { %90 = dma.hbm_to_vmem [thread:$0]  %s1055_s7, 1024, %s85_s28, [#allocation12], %s892_s1, %s892_s1, %s893_s13  }
  0x24   :  { %s786_s15 = scalar_lea.vmem %s28_s30, 128  ;;  %p791_p2 = scmp.lt.s32.totalorder %s28_s30, %s28_s30 }
  0x25   :  { %p787_p1 = scmp.ne.s32.totalorder %s28_s30, %s786_s15  ;;  %p792_p3 = scmp.lt.s32.totalorder %s786_s15, %s786_s15 }
  0x27   :  { %p793_p4 = por %p792_p3, %p791_p2 }
  0x29   :  { %p794_p5 = pnand %p793_p4, %p787_p1 }
  0x2b   :  { %797 = shalt.err (!%p794_p5)
}
  0x2c   :  { %30 = dma.hbm_to_vmem [thread:$0]  %s1048_s0, 128, %s28_s30, [#allocation3]  }
  0x2d   :  { %s894_s18 = smov [#allocation7]   ;;  %s895_s20 = smov [#allocation10]  }
  0x2e   :  { %s46_s19 = sshll.u32 %s894_s18, 4  ;;  %s70_s21 = sshll.u32 %s895_s20, 4  ;;  %s47_s19 = int_to_ptr.vmem [resolvable:$true] %s46_s19  ;;  %s71_s21 = int_to_ptr.vmem [resolvable:$true] %s70_s21 }
  0x2f   :  { %s806_s22 = scalar_lea.vmem %s47_s19, 256  ;;  %p811_p7 = scmp.lt.s32.totalorder %s47_s19, %s47_s19 }
  0x30   :  { %p807_p6 = scmp.ne.s32.totalorder %s47_s19, %s806_s22  ;;  %p812_p8 = scmp.lt.s32.totalorder %s806_s22, %s806_s22 }
  0x32   :  { %p813_p9 = por %p812_p8, %p811_p7 }
  0x34   :  { %p814_p10 = pnand %p813_p9, %p807_p6 }
  0x36   :  { %817 = shalt.err (!%p814_p10)
}
  0x37   :  { %52 = dma.hbm_to_vmem [thread:$0]  %s1050_s2, 256, %s47_s19, [#allocation6], %s892_s1, %s892_s1, %s893_s13  }
  0x38   :  { %s826_s0 = scalar_lea.vmem %s71_s21, 1024  ;;  %p831_p12 = scmp.lt.s32.totalorder %s71_s21, %s71_s21 }
  0x39   :  { %p827_p11 = scmp.ne.s32.totalorder %s71_s21, %s826_s0  ;;  %p832_p13 = scmp.lt.s32.totalorder %s826_s0, %s826_s0 }
  0x3b   :  { %p833_p0 = por %p832_p13, %p831_p12 }
  0x3d   :  { %p834_p1 = pnand %p833_p0, %p827_p11 }
  0x3f   :  { %837 = shalt.err (!%p834_p1)
}
  0x40   :  { %76 = dma.hbm_to_vmem [thread:$0]  %s1053_s5, 1024, %s71_s21, [#allocation9], %s892_s1, %s892_s1, %s893_s13  }
  0x41   :  { %s896_s26 = smov [#allocation13]  }
  0x42   :  { %s98_s27 = sshll.u32 %s896_s26, 4  ;;  %s99_s27 = int_to_ptr.vmem [resolvable:$true] %s98_s27 }
  0x43   :  { %s846_s28 = scalar_lea.vmem %s99_s27, 1024  ;;  %p851_p3 = scmp.lt.s32.totalorder %s99_s27, %s99_s27 }
  0x44   :  { %p847_p2 = scmp.ne.s32.totalorder %s99_s27, %s846_s28  ;;  %p852_p4 = scmp.lt.s32.totalorder %s846_s28, %s846_s28 }
  0x46   :  { %p853_p5 = por %p852_p4, %p851_p3 }
  0x48   :  { %p854_p6 = pnand %p853_p5, %p847_p2 }
  0x4a   :  { %857 = shalt.err (!%p854_p6)
}
  0x4b   :  { %104 = dma.hbm_to_vmem [thread:$0]  %s1057_s9, 1024, %s99_s27, [#allocation12], %s892_s1, %s892_s1, %s893_s13  }
  0x4c   :  { %878 = dma.done.wait [#allocation3], 128  }
  0x4d   :  { %879 = vsyncadd [#allocation3], 4294967168 }
  0x4e   :  { %880 = dma.done.wait [#allocation6], 384  }
  0x4f   :  { %881 = vsyncadd [#allocation6], 4294966912 }
  0x50   :  { %882 = dma.done.wait [#allocation9], 1152  }
  0x51   :  { %883 = vsyncadd [#allocation9], 4294966144 }
  0x52   :  { %884 = dma.done.wait [#allocation12], 2048  }
  0x53   :  { %885 = vsyncadd [#allocation12], 4294965248  ;;  %v897_v0 = vmov 0.0   ;;  %vm898_vm0 = vmmov 0   ;;  %vm137_vm1 = vcmask 1045504   ;;  %vm133_vm2 = vcmask 48128  }
  0x54   :  { %627 = vmatprep.subr.mxu1 %v897_v0  ;;  %629 = vmatprep.mubr.msk.f32.mxu1 %vm898_vm0, %v897_v0  ;;  %v132_v1 = vld [vmem:[#allocation8] sm:$0x3f]  ;;  %v129_v2 = vld [vmem:[#allocation5] sm:$0xff]  ;;  %v131_v3 = vld [vmem:[#allocation7 + $0x8] sm:$0xff]  ;;  %vm211_vm3 = vcmask 130048   ;;  %vm309_vm4 = vcmask 523264  }
  0x55   :  { %639 = vmatprep.subr.mxu0 %v897_v0  ;;  %655 = vmatprep.mubr.msk.f32.mxu0 %vm898_vm0, %v897_v0  ;;  %v130_v4 = vld [vmem:[#allocation7] sm:$0xff]  ;;  %v128_v5 = vld [vmem:[#allocation2] sm:$0xff]  ;;  %v300_v7 = vld [vmem:[#allocation10 + $0x30] sm:$0xff] }
  0x56   :  { %628 = vmatpush3.msk.msra.mxu1 %vm137_vm1, %v132_v1  ;;  %v301_v6 = vld [vmem:[#allocation10 + $0x38] sm:$0xff]  ;;  %v299_v8 = vld [vmem:[#allocation10 + $0x28] sm:$0xff]  ;;  %v298_v9 = vld [vmem:[#allocation10 + $0x20] sm:$0xff] }
  0x57   :  { %630 = vmatmul.mubr.msk.f32.vlgmr.msra.gmra.mxu1 %vm133_vm2, %v129_v2  ;;  %632 = vmatprep.subr.mxu1 %v897_v0  ;;  %v297_v10 = vld [vmem:[#allocation10 + $0x18] sm:$0xff]  ;;  %v296_v11 = vld [vmem:[#allocation10 + $0x10] sm:$0xff]  ;;  %v295_v12 = vld [vmem:[#allocation10 + $0x8] sm:$0xff] }
  0x58   :  { %633 = vmatpush3.msra.mxu1 %v131_v3  ;;  %636 = vmatprep.mubr.msk.f32.mxu1 %vm898_vm0, %v897_v0  ;;  %v294_v13 = vld [vmem:[#allocation10] sm:$0xff]  ;;  %v588_v17 = vld [vmem:[%s1052_s4] ss:$0 sm:$0xff]  ;;  %v390_v23 = vld [vmem:[#allocation11 + $0x30] sm:$0xff] }
  0x59   :  { %634 = vmatprep.subr.mxu1 %v897_v0  ;;  %640 = vmatpush3.msra.mxu0 %v301_v6  ;;  %v391_v22 = vld [vmem:[#allocation11 + $0x38] sm:$0xff]  ;;  %v389_v24 = vld [vmem:[#allocation11 + $0x28] sm:$0xff]  ;;  %v388_v25 = vld [vmem:[#allocation11 + $0x20] sm:$0xff] }
  0x5a   :  { %635 = vmatpush3.msra.mxu1 %v130_v4  ;;  %641 = vmatprep.subr.mxu0 %v897_v0  ;;  %v387_v26 = vld [vmem:[#allocation11 + $0x18] sm:$0xff]  ;;  %v386_v27 = vld [vmem:[#allocation11 + $0x10] sm:$0xff]  ;;  %v385_v28 = vld [vmem:[#allocation11 + $0x8] sm:$0xff] }
  0x5b   :  { %637 = vmatmul.mubr.msk.f32.vlgmr.msra.gmra.mxu1 %vm211_vm3, %v128_v5  ;;  %658 = vmatprep.subr.mxu1 %v897_v0  ;;  %v384_v29 = vld [vmem:[#allocation11] sm:$0xff]  ;;  %v589_v30 = vld [vmem:[%s1054_s6] ss:$0 sm:$0xff]  ;;  %v479_v36 = vld [vmem:[#allocation13 + $0x30] sm:$0xff] }
  0x5c   :  { %674 = vmatprep.mubr.msk.f32.mxu1 %vm898_vm0, %v897_v0  ;;  %642 = vmatpush3.msra.mxu0 %v300_v7  ;;  %v480_v35 = vld [vmem:[#allocation13 + $0x38] sm:$0xff]  ;;  %v478_v37 = vld [vmem:[#allocation13 + $0x28] sm:$0xff]  ;;  %v477_v38 = vld [vmem:[#allocation13 + $0x20] sm:$0xff] }
  0x5d   :  { %643 = vmatprep.subr.mxu0 %v897_v0  ;;  %659 = vmatpush3.msra.mxu1 %v391_v22  ;;  %v476_v39 = vld [vmem:[#allocation13 + $0x18] sm:$0xff]  ;;  %v475_v40 = vld [vmem:[#allocation13 + $0x10] sm:$0xff]  ;;  %v474_v41 = vld [vmem:[#allocation13 + $0x8] sm:$0xff] }
  0x5e   :  { %644 = vmatpush3.msra.mxu0 %v299_v8  ;;  %660 = vmatprep.subr.mxu1 %v897_v0  ;;  %v473_v42 = vld [vmem:[#allocation13] sm:$0xff]  ;;  %v591_v43 = vld [vmem:[%s1056_s8] ss:$0 sm:$0xff]  ;;  %s899_s8 = smov [#allocation14]  }
  0x5f   :  { %645 = vmatprep.subr.mxu0 %v897_v0  ;;  %661 = vmatpush3.msra.mxu1 %v390_v23  ;;  %v593_v48 = vld [vmem:[%s1058_s10] ss:$0 sm:$0xff]  ;;  %s573_s14 = sshll.u32 %s899_s8, 4  ;;  %s574_s14 = int_to_ptr.vmem [resolvable:$true] %s573_s14 }
  0x60   :  { %646 = vmatpush3.msra.mxu0 %v298_v9  ;;  %662 = vmatprep.subr.mxu1 %v897_v0  ;;  %s858_s3 = scalar_lea.vmem %s574_s14, 128  ;;  %p863_p8 = scmp.lt.s32.totalorder %s574_s14, %s574_s14 }
  0x61   :  { %647 = vmatprep.subr.mxu0 %v897_v0  ;;  %663 = vmatpush3.msra.mxu1 %v389_v24  ;;  %p859_p7 = scmp.ne.s32.totalorder %s574_s14, %s858_s3  ;;  %p864_p9 = scmp.lt.s32.totalorder %s858_s3, %s858_s3 }
  0x62   :  { %648 = vmatpush3.msra.mxu0 %v297_v10  ;;  %664 = vmatprep.subr.mxu1 %v897_v0 }
  0x63   :  { %649 = vmatprep.subr.mxu0 %v897_v0  ;;  %665 = vmatpush3.msra.mxu1 %v388_v25  ;;  %p865_p10 = por %p864_p9, %p863_p8 }
  0x64   :  { %650 = vmatpush3.msra.mxu0 %v296_v11  ;;  %666 = vmatprep.subr.mxu1 %v897_v0 }
  0x65   :  { %651 = vmatprep.subr.mxu0 %v897_v0  ;;  %667 = vmatpush3.msra.mxu1 %v387_v26  ;;  %p866_p11 = pnand %p865_p10, %p859_p7 }
  0x66   :  { %652 = vmatpush3.msra.mxu0 %v295_v12  ;;  %668 = vmatprep.subr.mxu1 %v897_v0 }
  0x67   :  { %653 = vmatprep.subr.mxu0 %v897_v0  ;;  %669 = vmatpush3.msra.mxu1 %v386_v27 }
  0x68   :  { %654 = vmatpush3.msra.mxu0 %v294_v13  ;;  %670 = vmatprep.subr.mxu1 %v897_v0 }
  0x69   :  { %677 = vmatprep.subr.mxu0 %v897_v0  ;;  %671 = vmatpush3.msra.mxu1 %v385_v28 }
  0x6a   :  { %672 = vmatprep.subr.mxu1 %v897_v0 }
  0x6b   :  { %673 = vmatpush3.msra.mxu1 %v384_v29 }
 0x117   :  { %v207_v14 = vpop.f32.mrf.mxu1 }
 0x119   :  { %v631_v15 = vpop.f32.mrf.mxu1 }
 0x11b   :  { %v281_v16 = vpop.f32.mrf.mxu1 }
 0x11c   :  { %v282_v18 = vadd.f32 %v281_v16, %v207_v14 }
 0x11d   :  { %v638_v19 = vpop.f32.mrf.mxu1 }
 0x11e   :  { %v292_v20 = vadd.f32 %v588_v17, %v282_v18 }
 0x120   :  { %708 = vtanh.f32 %v292_v20 }
 0x12d   :  { %v709_v21 = vpop.eup %708 }
 0x12e   :  { %656 = vmatmul.mubr.msk.f32.vlgmr.msra.gmra.mxu0 %vm309_vm4, %v709_v21 }
 0x12f   :  { %693 = vmatprep.mubr.msk.f32.mxu0 %vm898_vm0, %v897_v0  ;;  %678 = vmatpush3.msra.mxu0 %v480_v35 }
 0x130   :  { %679 = vmatprep.subr.mxu0 %v897_v0 }
 0x131   :  { %680 = vmatpush3.msra.mxu0 %v479_v36 }
 0x132   :  { %681 = vmatprep.subr.mxu0 %v897_v0 }
 0x133   :  { %682 = vmatpush3.msra.mxu0 %v478_v37 }
 0x134   :  { %683 = vmatprep.subr.mxu0 %v897_v0 }
 0x135   :  { %684 = vmatpush3.msra.mxu0 %v477_v38 }
 0x136   :  { %685 = vmatprep.subr.mxu0 %v897_v0 }
 0x137   :  { %686 = vmatpush3.msra.mxu0 %v476_v39 }
 0x138   :  { %687 = vmatprep.subr.mxu0 %v897_v0 }
 0x139   :  { %688 = vmatpush3.msra.mxu0 %v475_v40 }
 0x13a   :  { %689 = vmatprep.subr.mxu0 %v897_v0 }
 0x13b   :  { %690 = vmatpush3.msra.mxu0 %v474_v41 }
 0x13c   :  { %691 = vmatprep.subr.mxu0 %v897_v0 }
 0x13d   :  { %692 = vmatpush3.msra.mxu0 %v473_v42 }
 0x1ee   :  { %v379_v31 = vpop.f32.mrf.mxu0 }
 0x1ef   :  { %v380_v32 = vadd.f32 %v589_v30, %v379_v31 }
 0x1f0   :  { %v657_v33 = vpop.f32.mrf.mxu0 }
 0x1f1   :  { %710 = vtanh.f32 %v380_v32 }
 0x1fe   :  { %v711_v34 = vpop.eup %710 }
 0x1ff   :  { %675 = vmatmul.mubr.msk.f32.vlgmr.msra.gmra.mxu1 %vm309_vm4, %v711_v34 }
 0x2bf   :  { %v468_v44 = vpop.f32.mrf.mxu1 }
 0x2c0   :  { %v469_v45 = vadd.f32 %v591_v43, %v468_v44 }
 0x2c1   :  { %v676_v46 = vpop.f32.mrf.mxu1 }
 0x2c2   :  { %712 = vtanh.f32 %v469_v45 }
 0x2cf   :  { %v713_v47 = vpop.eup %712 }
 0x2d0   :  { %694 = vmatmul.mubr.msk.f32.vlgmr.msra.gmra.mxu0 %vm309_vm4, %v713_v47 }
 0x390   :  { %v557_v49 = vpop.f32.mrf.mxu0 }
 0x391   :  { %v558_v50 = vadd.f32 %v593_v48, %v557_v49 }
 0x392   :  { %v695_v51 = vpop.f32.mrf.mxu0 }
 0x393   :  { %v561_v52 = vsub.f32 0.0, %v558_v50 }
 0x395   :  { %v562_v53 = vmul.f32 1.442695, %v561_v52 }
 0x397   :  { %714 = vpow2.f32 %v562_v53 }
 0x3a4   :  { %v715_v54 = vpop.eup %714 }
 0x3a5   :  { %v564_v55 = vadd.f32 1.0, %v715_v54 }
 0x3a7   :  { %716 = vrcp.f32 %v564_v55 }
 0x3b4   :  { %v717_v56 = vpop.eup %716 }
 0x3b5   :  { %566 = vst [vmem:[#allocation14] sm:$0xff] %v717_v56 }
 0x3b6   :  { %869 = shalt.err (!%p866_p11)
}
 0x3b7   :  { %576 = dma.vmem_to_hbm [thread:$0]  %s574_s14, 128, %s1059_s11, [#allocation4]  }
 0x3b8   :  { %886 = dma.done.wait [#allocation4], 128  }
 0x3b9   :  { %887 = vsyncadd [#allocation4], 4294967168 }
 0x3ba   :  { %580 = vsyncpa [#allocation3], 1 }
 0x3bb   :  { %581 = vsyncpa [#allocation6], 1 }
 0x3bc   :  { %582 = vsyncpa [#allocation9], 1 }
 0x3bd   :  { %583 = vsyncpa [#allocation12], 1 }
 0x3be   :  { %584 = vsyncpa [#allocation4], 1 }

</bundles_post_ra>
